<compile_context>
chip_gen: v7x
topology: tpu7x:2x2x1
jax: 0.10.0
libtpu: 0.0.40
codegen_flags: <defaults>
</compile_context>

<pallas_src>
import functools

import jax
import jax.numpy as jnp
from jax import lax
from jax.experimental import pallas as pl
from jax.experimental.pallas import tpu as pltpu

E = 25    # vec_dim (embedding dim)
H = 40    # LSTM hidden size
L1 = 16   # first linear output
L2 = 3    # final output classes
GP = 128  # per-gate lane pitch in the packed gate layout (128-lane aligned)
NG = 4    # number of LSTM gates (PyTorch order: i, f, g, o)

# Guard the full unroll (feedback): beyond these static trip counts switch to loops.
_UNROLL_T_MAX = 32
_UNROLL_GATHER_MAX = 256


def lstm_head_kernel(ids_ref, emb_gates_ref, whh_ref, wlin_ref, blin_ref,
                     wout_ref, bout_ref, out_ref, xg_buf, pooled_buf, *, T, N):
    """Whole forward in one kernel: gate-table gather, LSTM, max-pool, 2 dense layers.

    ids_ref:       (T*N,) int32 in SMEM   flattened token ids (row-major over (T, N))
    emb_gates_ref: (V, 4*GP)    precomputed  table @ W_ih_packed + b_packed
    whh_ref:       (H, 4*GP)    packed recurrent weights (gate k in lanes [k*GP, k*GP+H))
    wlin_ref:      (H, L1), blin_ref: (1, L1)
    wout_ref:      (L1, L2), bout_ref: (1, L2)
    out_ref:       (T, L2)
    xg_buf:        (T*N, 4*GP) VMEM scratch  gathered per-token gate pre-activations
    pooled_buf:    (T, H)      VMEM scratch  per-timestep max over the N axis
    """
    TN = T * N

    # ---- 1) Gather per-token gate pre-activations (off the serial chain). ----
    # True row gather: SMEM scalar id -> lane-aligned (1, 4*GP) VMEM read.
    def gather_row(i):
        idx = ids_ref[i]
        xg_buf[pl.ds(i, 1), :] = emb_gates_ref[pl.ds(idx, 1), :]

    if TN <= _UNROLL_GATHER_MAX:
        for i in range(TN):
            gather_row(i)
    else:
        @pl.loop(0, TN)
        def _(i):
            gather_row(i)

    # ---- 2) LSTM recurrence: ONE packed recurrent matmul per step. ----
    whh = whh_ref[...]  # (H, 4*GP); loaded once, reused across all T steps

    def step(t, carry):
        h, c = carry
        xg_t = xg_buf[pl.ds(t * N, N), :]                              # (N, 4*GP)
        g = xg_t + jnp.dot(h, whh, preferred_element_type=jnp.float32)  # (N, 4*GP)
        # Gate slices start at 128-lane (vreg) boundaries -> no cross-lane relayout.
        gi = jax.nn.sigmoid(g[:, 0 * GP:0 * GP + H])
        gf = jax.nn.sigmoid(g[:, 1 * GP:1 * GP + H])
        gg = jnp.tanh(g[:, 2 * GP:2 * GP + H])
        go = jax.nn.sigmoid(g[:, 3 * GP:3 * GP + H])
        c = gf * c + gi * gg
        h = go * jnp.tanh(c)
        # torch.max(h_lstm, 1): max over the lstm-batch axis N at this timestep,
        # written straight into the preallocated pooled buffer (no concat).
        pooled_buf[pl.ds(t, 1), :] = jnp.max(h, axis=0, keepdims=True)
        return h, c

    h0 = jnp.zeros((N, H), jnp.float32)
    c0 = jnp.zeros((N, H), jnp.float32)
    if T <= _UNROLL_T_MAX:
        carry = (h0, c0)
        for t in range(T):            # fully unrolled: LLO sees the whole chain
            carry = step(t, carry)
    else:
        # Large T: keep vreg pressure / program size flat.
        lax.fori_loop(0, T, step, (h0, c0), unroll=4)

    # TODO(synk): on v6e/v7x the packed W_hh (4H=160 <= 256) could be kept resident
    # in MXU staging registers across all T steps via pltpu.matmul_push_rhs /
    # matmul_acc_lhs / matmul_pop; not used here for portability across v5e.

    # ---- 3) Head: Linear + ReLU, then Linear. ----
    pooled = pooled_buf[...]                                           # (T, H)
    lin = jnp.maximum(
        jnp.dot(pooled, wlin_ref[...], preferred_element_type=jnp.float32)
        + blin_ref[...], 0.0)                                          # (T, L1)
    out_ref[...] = (jnp.dot(lin, wout_ref[...],
                            preferred_element_type=jnp.float32)
                    + bout_ref[...])                                   # (T, L2)


def pack_params(params):
    """One-time re-layout of PyTorch-style params into the kernel layout.

    * W_hh / W_ih / biases are packed into a 4*128-lane-wide layout: gate k lives
      in lanes [k*128, k*128+H); all other lanes are exact zeros.
    * Because the embedding table is frozen, x @ W_ih + (b_ih + b_hh) is a pure
      function of the token id, so it is folded into a per-token lookup table
      emb_gates[v] = table[v] @ W_ih_packed + b_packed   (shape (V, 4*128)).
    """
    w_ih, w_hh = params["w_ih"], params["w_hh"]            # (4H, E), (4H, H)
    b = params["b_ih"] + params["b_hh"]                    # (4H,)

    wih_packed = jnp.zeros((E, NG * GP), jnp.float32)
    whh_packed = jnp.zeros((H, NG * GP), jnp.float32)
    b_packed = jnp.zeros((1, NG * GP), jnp.float32)
    for k in range(NG):
        wih_packed = wih_packed.at[:, k * GP:k * GP + H].set(
            w_ih[k * H:(k + 1) * H, :].T)
        whh_packed = whh_packed.at[:, k * GP:k * GP + H].set(
            w_hh[k * H:(k + 1) * H, :].T)
        b_packed = b_packed.at[:, k * GP:k * GP + H].set(
            b[k * H:(k + 1) * H][None, :])

    table = params["embedding"].astype(jnp.float32)        # (V, E)
    # TODO(synk): for a large vocab, keep the (V, E) table (in HBM, DMA-gathering
    # rows) and do the packed x @ W_ih inside the kernel instead of materialising
    # a (V, 4*128) gate table.
    emb_gates = (jnp.dot(table, wih_packed, preferred_element_type=jnp.float32)
                 + b_packed)                               # (V, 4*GP)

    return {
        "emb_gates": emb_gates,
        "whh_packed": whh_packed,
        "wlin_t": params["w_lin"].T,                       # (H, L1)
        "blin": params["b_lin"][None, :],                  # (1, L1)
        "wout_t": params["w_out"].T,                       # (L1, L2)
        "bout": params["b_out"][None, :],                  # (1, L2)
    }


@jax.jit
def model_forward(x_tokens, packed):
    # nn.LSTM default batch_first=False: dim0 of the embedded input is time.
    T, N = x_tokens.shape
    ids_flat = x_tokens.reshape(T * N).astype(jnp.int32)

    kernel = pl.pallas_call(
        functools.partial(lstm_head_kernel, T=T, N=N),
        out_shape=jax.ShapeDtypeStruct((T, L2), jnp.float32),
        in_specs=[
            pl.BlockSpec(memory_space=pltpu.MemorySpace.SMEM),   # token ids
            pl.BlockSpec(memory_space=pltpu.MemorySpace.VMEM),   # emb_gates
            pl.BlockSpec(memory_space=pltpu.MemorySpace.VMEM),   # whh_packed
            pl.BlockSpec(memory_space=pltpu.MemorySpace.VMEM),   # wlin_t
            pl.BlockSpec(memory_space=pltpu.MemorySpace.VMEM),   # blin
            pl.BlockSpec(memory_space=pltpu.MemorySpace.VMEM),   # wout_t
            pl.BlockSpec(memory_space=pltpu.MemorySpace.VMEM),   # bout
        ],
        out_specs=pl.BlockSpec(memory_space=pltpu.MemorySpace.VMEM),
        scratch_shapes=[
            pltpu.VMEM((T * N, NG * GP), jnp.float32),   # gathered gate pre-acts
            pltpu.VMEM((T, H), jnp.float32),             # pooled rows
        ],
    )
    # TODO(synk): with many independent sequences, add a leading 'parallel' grid
    # axis over sequences so v7x's two TensorCores are both used; a single
    # recurrence chain itself cannot be split.
    return kernel(ids_flat, packed["emb_gates"], packed["whh_packed"],
                  packed["wlin_t"], packed["blin"],
                  packed["wout_t"], packed["bout"])


def reference_forward(x_tokens, params):
    """Pure-JAX reference replicating the PyTorch forward exactly."""
    emb = params["embedding"][x_tokens].astype(jnp.float32)  # (T, N, E)
    T, N, _ = emb.shape
    h = jnp.zeros((N, H), jnp.float32)
    c = jnp.zeros((N, H), jnp.float32)
    wih_t = params["w_ih"].T
    whh_t = params["w_hh"].T
    b = params["b_ih"] + params["b_hh"]
    hs = []
    for t in range(T):
        gates = emb[t] @ wih_t + h @ whh_t + b
        i = jax.nn.sigmoid(gates[:, 0:H])
        f = jax.nn.sigmoid(gates[:, H:2 * H])
        g = jnp.tanh(gates[:, 2 * H:3 * H])
        o = jax.nn.sigmoid(gates[:, 3 * H:4 * H])
        c = f * c + i * g
        h = o * jnp.tanh(c)
        hs.append(h)
    h_lstm = jnp.stack(hs)                # (T, N, H)
    pooled = jnp.max(h_lstm, axis=1)      # (T, H)
    lin = jax.nn.relu(pooled @ params["w_lin"].T + params["b_lin"])
    return lin @ params["w_out"].T + params["b_out"]


def init_params(key, vocab_size):
    # Deterministic synthetic init (PyTorch-style uniform bounds); no checkpoint load.
    ks = jax.random.split(key, 9)
    k_lstm = 1.0 / jnp.sqrt(H)
    k_lin = 1.0 / jnp.sqrt(H)
    k_out = 1.0 / jnp.sqrt(L1)
    u = lambda k, shape, bound: jax.random.uniform(
        k, shape, jnp.float32, minval=-bound, maxval=bound)
    return {
        # original frozen table is all zeros; use deterministic random values instead
        "embedding": jax.random.normal(ks[0], (vocab_size, E), jnp.float32) * 0.1,
        "w_ih": u(ks[1], (4 * H, E), k_lstm),
        "w_hh": u(ks[2], (4 * H, H), k_lstm),
        "b_ih": u(ks[3], (4 * H,), k_lstm),
        "b_hh": u(ks[4], (4 * H,), k_lstm),
        "w_lin": u(ks[5], (L1, H), k_lin),
        "b_lin": u(ks[6], (L1,), k_lin),
        "w_out": u(ks[7], (L2, L1), k_out),
        "b_out": u(ks[8], (L2,), k_out),
    }
    # TODO(synk): nn.Dropout2d(0.1) is declared in __init__ but never applied in
    # forward(), so it is intentionally omitted.


if __name__ == "__main__":
    key = jax.random.PRNGKey(0)
    k_params, k_tokens = jax.random.split(key)

    vocab_size = 50
    B, S = 2, 8  # token ids: batch=2, seq=8
    params = init_params(k_params, vocab_size)
    packed = pack_params(params)
    x_tokens = jax.random.randint(k_tokens, (B, S), 0, vocab_size, dtype=jnp.int32)

    out = model_forward(x_tokens, packed)
    out = jax.block_until_ready(out)

    ref = reference_forward(x_tokens, params)
    assert out.shape == (B, L2), out.shape
    assert jnp.allclose(out, ref, atol=1e-4, rtol=1e-4), (out, ref)

    print("KERNEL_OK")
</pallas_src>

<mosaic_0001>
module attributes {stable_mosaic.version = 11 : i64} {
  func.func @lstm_head_kernel(%arg0: memref<16xi32, #tpu.memory_space<smem>>, %arg1: memref<50x512xf32, #tpu.memory_space<vmem>>, %arg2: memref<40x512xf32, #tpu.memory_space<vmem>>, %arg3: memref<40x16xf32, #tpu.memory_space<vmem>>, %arg4: memref<1x16xf32, #tpu.memory_space<vmem>>, %arg5: memref<16x3xf32, #tpu.memory_space<vmem>>, %arg6: memref<1x3xf32, #tpu.memory_space<vmem>>, %arg7: memref<2x3xf32, #tpu.memory_space<vmem>>, %arg8: memref<16x512xf32, #tpu.memory_space<vmem>>, %arg9: memref<2x40xf32, #tpu.memory_space<vmem>>) attributes {dimension_semantics = [], scalar_prefetch = 0 : i64, scratch_operands = 2 : i64, tpu.core_type = #tpu.core_type<tc>} {
    %c0 = arith.constant 0 : index
    %0 = memref.load %arg0[%c0] : memref<16xi32, #tpu.memory_space<smem>>
    %1 = arith.index_cast %0 : i32 to index
    %c0_0 = arith.constant 0 : index
    %2 = vector.load %arg1[%1, %c0_0] : memref<50x512xf32, #tpu.memory_space<vmem>>, vector<1x512xf32>
    %c0_1 = arith.constant 0 : index
    %c0_2 = arith.constant 0 : index
    %3 = vector.load %arg8[%c0_1, %c0_2] : memref<16x512xf32, #tpu.memory_space<vmem>>, vector<1x512xf32>
    tpu.vector_store %arg8[%c0_1, %c0_2], %2 {strides = array<i32>} : memref<16x512xf32, #tpu.memory_space<vmem>>, vector<1x512xf32>,
    %c1 = arith.constant 1 : index
    %4 = memref.load %arg0[%c1] : memref<16xi32, #tpu.memory_space<smem>>
    %5 = arith.index_cast %4 : i32 to index
    %c0_3 = arith.constant 0 : index
    %6 = vector.load %arg1[%5, %c0_3] : memref<50x512xf32, #tpu.memory_space<vmem>>, vector<1x512xf32>
    %c1_4 = arith.constant 1 : index
    %c0_5 = arith.constant 0 : index
    %7 = vector.load %arg8[%c1_4, %c0_5] : memref<16x512xf32, #tpu.memory_space<vmem>>, vector<1x512xf32>
    tpu.vector_store %arg8[%c1_4, %c0_5], %6 {strides = array<i32>} : memref<16x512xf32, #tpu.memory_space<vmem>>, vector<1x512xf32>,
    %c2 = arith.constant 2 : index
    %8 = memref.load %arg0[%c2] : memref<16xi32, #tpu.memory_space<smem>>
    %9 = arith.index_cast %8 : i32 to index
    %c0_6 = arith.constant 0 : index
    %10 = vector.load %arg1[%9, %c0_6] : memref<50x512xf32, #tpu.memory_space<vmem>>, vector<1x512xf32>
    %c2_7 = arith.constant 2 : index
    %c0_8 = arith.constant 0 : index
    %11 = vector.load %arg8[%c2_7, %c0_8] : memref<16x512xf32, #tpu.memory_space<vmem>>, vector<1x512xf32>
    tpu.vector_store %arg8[%c2_7, %c0_8], %10 {strides = array<i32>} : memref<16x512xf32, #tpu.memory_space<vmem>>, vector<1x512xf32>,
    %c3 = arith.constant 3 : index
    %12 = memref.load %arg0[%c3] : memref<16xi32, #tpu.memory_space<smem>>
    %13 = arith.index_cast %12 : i32 to index
    %c0_9 = arith.constant 0 : index
    %14 = vector.load %arg1[%13, %c0_9] : memref<50x512xf32, #tpu.memory_space<vmem>>, vector<1x512xf32>
    %c3_10 = arith.constant 3 : index
    %c0_11 = arith.constant 0 : index
    %15 = vector.load %arg8[%c3_10, %c0_11] : memref<16x512xf32, #tpu.memory_space<vmem>>, vector<1x512xf32>
    tpu.vector_store %arg8[%c3_10, %c0_11], %14 {strides = array<i32>} : memref<16x512xf32, #tpu.memory_space<vmem>>, vector<1x512xf32>,
    %c4 = arith.constant 4 : index
    %16 = memref.load %arg0[%c4] : memref<16xi32, #tpu.memory_space<smem>>
    %17 = arith.index_cast %16 : i32 to index
    %c0_12 = arith.constant 0 : index
    %18 = vector.load %arg1[%17, %c0_12] : memref<50x512xf32, #tpu.memory_space<vmem>>, vector<1x512xf32>
    %c4_13 = arith.constant 4 : index
    %c0_14 = arith.constant 0 : index
    %19 = vector.load %arg8[%c4_13, %c0_14] : memref<16x512xf32, #tpu.memory_space<vmem>>, vector<1x512xf32>
    tpu.vector_store %arg8[%c4_13, %c0_14], %18 {strides = array<i32>} : memref<16x512xf32, #tpu.memory_space<vmem>>, vector<1x512xf32>,
    %c5 = arith.constant 5 : index
    %20 = memref.load %arg0[%c5] : memref<16xi32, #tpu.memory_space<smem>>
    %21 = arith.index_cast %20 : i32 to index
    %c0_15 = arith.constant 0 : index
    %22 = vector.load %arg1[%21, %c0_15] : memref<50x512xf32, #tpu.memory_space<vmem>>, vector<1x512xf32>
    %c5_16 = arith.constant 5 : index
    %c0_17 = arith.constant 0 : index
    %23 = vector.load %arg8[%c5_16, %c0_17] : memref<16x512xf32, #tpu.memory_space<vmem>>, vector<1x512xf32>
    tpu.vector_store %arg8[%c5_16, %c0_17], %22 {strides = array<i32>} : memref<16x512xf32, #tpu.memory_space<vmem>>, vector<1x512xf32>,
    %c6 = arith.constant 6 : index
    %24 = memref.load %arg0[%c6] : memref<16xi32, #tpu.memory_space<smem>>
    %25 = arith.index_cast %24 : i32 to index
    %c0_18 = arith.constant 0 : index
    %26 = vector.load %arg1[%25, %c0_18] : memref<50x512xf32, #tpu.memory_space<vmem>>, vector<1x512xf32>
    %c6_19 = arith.constant 6 : index
    %c0_20 = arith.constant 0 : index
    %27 = vector.load %arg8[%c6_19, %c0_20] : memref<16x512xf32, #tpu.memory_space<vmem>>, vector<1x512xf32>
    tpu.vector_store %arg8[%c6_19, %c0_20], %26 {strides = array<i32>} : memref<16x512xf32, #tpu.memory_space<vmem>>, vector<1x512xf32>,
    %c7 = arith.constant 7 : index
    %28 = memref.load %arg0[%c7] : memref<16xi32, #tpu.memory_space<smem>>
    %29 = arith.index_cast %28 : i32 to index
    %c0_21 = arith.constant 0 : index
    %30 = vector.load %arg1[%29, %c0_21] : memref<50x512xf32, #tpu.memory_space<vmem>>, vector<1x512xf32>
    %c7_22 = arith.constant 7 : index
    %c0_23 = arith.constant 0 : index
    %31 = vector.load %arg8[%c7_22, %c0_23] : memref<16x512xf32, #tpu.memory_space<vmem>>, vector<1x512xf32>
    tpu.vector_store %arg8[%c7_22, %c0_23], %30 {strides = array<i32>} : memref<16x512xf32, #tpu.memory_space<vmem>>, vector<1x512xf32>,
    %c8 = arith.constant 8 : index
    %32 = memref.load %arg0[%c8] : memref<16xi32, #tpu.memory_space<smem>>
    %33 = arith.index_cast %32 : i32 to index
    %c0_24 = arith.constant 0 : index
    %34 = vector.load %arg1[%33, %c0_24] : memref<50x512xf32, #tpu.memory_space<vmem>>, vector<1x512xf32>
    %c8_25 = arith.constant 8 : index
    %c0_26 = arith.constant 0 : index
    %35 = vector.load %arg8[%c8_25, %c0_26] : memref<16x512xf32, #tpu.memory_space<vmem>>, vector<1x512xf32>
    tpu.vector_store %arg8[%c8_25, %c0_26], %34 {strides = array<i32>} : memref<16x512xf32, #tpu.memory_space<vmem>>, vector<1x512xf32>,
    %c9 = arith.constant 9 : index
    %36 = memref.load %arg0[%c9] : memref<16xi32, #tpu.memory_space<smem>>
    %37 = arith.index_cast %36 : i32 to index
    %c0_27 = arith.constant 0 : index
    %38 = vector.load %arg1[%37, %c0_27] : memref<50x512xf32, #tpu.memory_space<vmem>>, vector<1x512xf32>
    %c9_28 = arith.constant 9 : index
    %c0_29 = arith.constant 0 : index
    %39 = vector.load %arg8[%c9_28, %c0_29] : memref<16x512xf32, #tpu.memory_space<vmem>>, vector<1x512xf32>
    tpu.vector_store %arg8[%c9_28, %c0_29], %38 {strides = array<i32>} : memref<16x512xf32, #tpu.memory_space<vmem>>, vector<1x512xf32>,
    %c10 = arith.constant 10 : index
    %40 = memref.load %arg0[%c10] : memref<16xi32, #tpu.memory_space<smem>>
    %41 = arith.index_cast %40 : i32 to index
    %c0_30 = arith.constant 0 : index
    %42 = vector.load %arg1[%41, %c0_30] : memref<50x512xf32, #tpu.memory_space<vmem>>, vector<1x512xf32>
    %c10_31 = arith.constant 10 : index
    %c0_32 = arith.constant 0 : index
    %43 = vector.load %arg8[%c10_31, %c0_32] : memref<16x512xf32, #tpu.memory_space<vmem>>, vector<1x512xf32>
    tpu.vector_store %arg8[%c10_31, %c0_32], %42 {strides = array<i32>} : memref<16x512xf32, #tpu.memory_space<vmem>>, vector<1x512xf32>,
    %c11 = arith.constant 11 : index
    %44 = memref.load %arg0[%c11] : memref<16xi32, #tpu.memory_space<smem>>
    %45 = arith.index_cast %44 : i32 to index
    %c0_33 = arith.constant 0 : index
    %46 = vector.load %arg1[%45, %c0_33] : memref<50x512xf32, #tpu.memory_space<vmem>>, vector<1x512xf32>
    %c11_34 = arith.constant 11 : index
    %c0_35 = arith.constant 0 : index
    %47 = vector.load %arg8[%c11_34, %c0_35] : memref<16x512xf32, #tpu.memory_space<vmem>>, vector<1x512xf32>
    tpu.vector_store %arg8[%c11_34, %c0_35], %46 {strides = array<i32>} : memref<16x512xf32, #tpu.memory_space<vmem>>, vector<1x512xf32>,
    %c12 = arith.constant 12 : index
    %48 = memref.load %arg0[%c12] : memref<16xi32, #tpu.memory_space<smem>>
    %49 = arith.index_cast %48 : i32 to index
    %c0_36 = arith.constant 0 : index
    %50 = vector.load %arg1[%49, %c0_36] : memref<50x512xf32, #tpu.memory_space<vmem>>, vector<1x512xf32>
    %c12_37 = arith.constant 12 : index
    %c0_38 = arith.constant 0 : index
    %51 = vector.load %arg8[%c12_37, %c0_38] : memref<16x512xf32, #tpu.memory_space<vmem>>, vector<1x512xf32>
    tpu.vector_store %arg8[%c12_37, %c0_38], %50 {strides = array<i32>} : memref<16x512xf32, #tpu.memory_space<vmem>>, vector<1x512xf32>,
    %c13 = arith.constant 13 : index
    %52 = memref.load %arg0[%c13] : memref<16xi32, #tpu.memory_space<smem>>
    %53 = arith.index_cast %52 : i32 to index
    %c0_39 = arith.constant 0 : index
    %54 = vector.load %arg1[%53, %c0_39] : memref<50x512xf32, #tpu.memory_space<vmem>>, vector<1x512xf32>
    %c13_40 = arith.constant 13 : index
    %c0_41 = arith.constant 0 : index
    %55 = vector.load %arg8[%c13_40, %c0_41] : memref<16x512xf32, #tpu.memory_space<vmem>>, vector<1x512xf32>
    tpu.vector_store %arg8[%c13_40, %c0_41], %54 {strides = array<i32>} : memref<16x512xf32, #tpu.memory_space<vmem>>, vector<1x512xf32>,
    %c14 = arith.constant 14 : index
    %56 = memref.load %arg0[%c14] : memref<16xi32, #tpu.memory_space<smem>>
    %57 = arith.index_cast %56 : i32 to index
    %c0_42 = arith.constant 0 : index
    %58 = vector.load %arg1[%57, %c0_42] : memref<50x512xf32, #tpu.memory_space<vmem>>, vector<1x512xf32>
    %c14_43 = arith.constant 14 : index
    %c0_44 = arith.constant 0 : index
    %59 = vector.load %arg8[%c14_43, %c0_44] : memref<16x512xf32, #tpu.memory_space<vmem>>, vector<1x512xf32>
    tpu.vector_store %arg8[%c14_43, %c0_44], %58 {strides = array<i32>} : memref<16x512xf32, #tpu.memory_space<vmem>>, vector<1x512xf32>,
    %c15 = arith.constant 15 : index
    %60 = memref.load %arg0[%c15] : memref<16xi32, #tpu.memory_space<smem>>
    %61 = arith.index_cast %60 : i32 to index
    %c0_45 = arith.constant 0 : index
    %62 = vector.load %arg1[%61, %c0_45] : memref<50x512xf32, #tpu.memory_space<vmem>>, vector<1x512xf32>
    %c15_46 = arith.constant 15 : index
    %c0_47 = arith.constant 0 : index
    %63 = vector.load %arg8[%c15_46, %c0_47] : memref<16x512xf32, #tpu.memory_space<vmem>>, vector<1x512xf32>
    tpu.vector_store %arg8[%c15_46, %c0_47], %62 {strides = array<i32>} : memref<16x512xf32, #tpu.memory_space<vmem>>, vector<1x512xf32>,
    %c0_48 = arith.constant 0 : index
    %c0_49 = arith.constant 0 : index
    %64 = vector.load %arg2[%c0_48, %c0_49] : memref<40x512xf32, #tpu.memory_space<vmem>>, vector<40x512xf32>
    %cst = arith.constant 0.000000e+00 : f32
    %65 = vector.broadcast %cst : f32 to vector<8x40xf32>
    %cst_50 = arith.constant 0.000000e+00 : f32
    %66 = vector.broadcast %cst_50 : f32 to vector<8x40xf32>
    %c0_51 = arith.constant 0 : index
    %c0_52 = arith.constant 0 : index
    %67 = vector.load %arg8[%c0_51, %c0_52] : memref<16x512xf32, #tpu.memory_space<vmem>>, vector<8x512xf32>
    %cst_53 = arith.constant dense<0.000000e+00> : vector<8x512xf32>
    %68 = tpu.matmul %65, %64, %cst_53 {dimension_numbers = #tpu.dot_dimension_numbers<[1], [0], [0], [1], [0, 0, 1, 1], [], []>} : vector<8x40xf32>, vector<40x512xf32>, vector<8x512xf32> -> vector<8x512xf32>
    %69 = arith.addf %67, %68 : vector<8x512xf32>
    %70 = vector.extract_strided_slice %69 {offsets = [0, 0], sizes = [8, 40], strides = [1, 1]} : vector<8x512xf32> to vector<8x40xf32>
    %71 = arith.negf %70 : vector<8x40xf32>
    %72 = math.exp %71 : vector<8x40xf32>
    %cst_54 = arith.constant 1.000000e+00 : f32
    %73 = vector.broadcast %cst_54 : f32 to vector<8x40xf32>
    %74 = arith.addf %73, %72 : vector<8x40xf32>
    %75 = arith.divf %73, %74 : vector<8x40xf32>
    %76 = vector.extract_strided_slice %69 {offsets = [0, 128], sizes = [8, 40], strides = [1, 1]} : vector<8x512xf32> to vector<8x40xf32>
    %77 = arith.negf %76 : vector<8x40xf32>
    %78 = math.exp %77 : vector<8x40xf32>
    %cst_55 = arith.constant 1.000000e+00 : f32
    %79 = vector.broadcast %cst_55 : f32 to vector<8x40xf32>
    %80 = arith.addf %79, %78 : vector<8x40xf32>
    %81 = arith.divf %79, %80 : vector<8x40xf32>
    %82 = vector.extract_strided_slice %69 {offsets = [0, 256], sizes = [8, 40], strides = [1, 1]} : vector<8x512xf32> to vector<8x40xf32>
    %83 = math.tanh %82 : vector<8x40xf32>
    %84 = vector.extract_strided_slice %69 {offsets = [0, 384], sizes = [8, 40], strides = [1, 1]} : vector<8x512xf32> to vector<8x40xf32>
    %85 = arith.negf %84 : vector<8x40xf32>
    %86 = math.exp %85 : vector<8x40xf32>
    %cst_56 = arith.constant 1.000000e+00 : f32
    %87 = vector.broadcast %cst_56 : f32 to vector<8x40xf32>
    %88 = arith.addf %87, %86 : vector<8x40xf32>
    %89 = arith.divf %87, %88 : vector<8x40xf32>
    %90 = arith.mulf %81, %66 : vector<8x40xf32>
    %91 = arith.mulf %75, %83 : vector<8x40xf32>
    %92 = arith.addf %90, %91 : vector<8x40xf32>
    %93 = math.tanh %92 : vector<8x40xf32>
    %94 = arith.mulf %89, %93 : vector<8x40xf32>
    %cst_57 = arith.constant dense<0xFF800000> : vector<40xf32>
    %95 = vector.multi_reduction <maximumf>, %94, %cst_57 [0] : vector<8x40xf32> to vector<40xf32>
    %96 = vector.shape_cast %95 : vector<40xf32> to vector<1x40xf32>
    %c0_58 = arith.constant 0 : index
    %c0_59 = arith.constant 0 : index
    %97 = vector.load %arg9[%c0_58, %c0_59] : memref<2x40xf32, #tpu.memory_space<vmem>>, vector<1x40xf32>
    tpu.vector_store %arg9[%c0_58, %c0_59], %96 {strides = array<i32>} : memref<2x40xf32, #tpu.memory_space<vmem>>, vector<1x40xf32>,
    %c8_60 = arith.constant 8 : index
    %c0_61 = arith.constant 0 : index
    %98 = vector.load %arg8[%c8_60, %c0_61] : memref<16x512xf32, #tpu.memory_space<vmem>>, vector<8x512xf32>
    %cst_62 = arith.constant dense<0.000000e+00> : vector<8x512xf32>
    %99 = tpu.matmul %94, %64, %cst_62 {dimension_numbers = #tpu.dot_dimension_numbers<[1], [0], [0], [1], [0, 0, 1, 1], [], []>} : vector<8x40xf32>, vector<40x512xf32>, vector<8x512xf32> -> vector<8x512xf32>
    %100 = arith.addf %98, %99 : vector<8x512xf32>
    %101 = vector.extract_strided_slice %100 {offsets = [0, 0], sizes = [8, 40], strides = [1, 1]} : vector<8x512xf32> to vector<8x40xf32>
    %102 = arith.negf %101 : vector<8x40xf32>
    %103 = math.exp %102 : vector<8x40xf32>
    %cst_63 = arith.constant 1.000000e+00 : f32
    %104 = vector.broadcast %cst_63 : f32 to vector<8x40xf32>
    %105 = arith.addf %104, %103 : vector<8x40xf32>
    %106 = arith.divf %104, %105 : vector<8x40xf32>
    %107 = vector.extract_strided_slice %100 {offsets = [0, 128], sizes = [8, 40], strides = [1, 1]} : vector<8x512xf32> to vector<8x40xf32>
    %108 = arith.negf %107 : vector<8x40xf32>
    %109 = math.exp %108 : vector<8x40xf32>
    %cst_64 = arith.constant 1.000000e+00 : f32
    %110 = vector.broadcast %cst_64 : f32 to vector<8x40xf32>
    %111 = arith.addf %110, %109 : vector<8x40xf32>
    %112 = arith.divf %110, %111 : vector<8x40xf32>
    %113 = vector.extract_strided_slice %100 {offsets = [0, 256], sizes = [8, 40], strides = [1, 1]} : vector<8x512xf32> to vector<8x40xf32>
    %114 = math.tanh %113 : vector<8x40xf32>
    %115 = vector.extract_strided_slice %100 {offsets = [0, 384], sizes = [8, 40], strides = [1, 1]} : vector<8x512xf32> to vector<8x40xf32>
    %116 = arith.negf %115 : vector<8x40xf32>
    %117 = math.exp %116 : vector<8x40xf32>
    %cst_65 = arith.constant 1.000000e+00 : f32
    %118 = vector.broadcast %cst_65 : f32 to vector<8x40xf32>
    %119 = arith.addf %118, %117 : vector<8x40xf32>
    %120 = arith.divf %118, %119 : vector<8x40xf32>
    %121 = arith.mulf %112, %92 : vector<8x40xf32>
    %122 = arith.mulf %106, %114 : vector<8x40xf32>
    %123 = arith.addf %121, %122 : vector<8x40xf32>
    %124 = math.tanh %123 : vector<8x40xf32>
    %125 = arith.mulf %120, %124 : vector<8x40xf32>
    %cst_66 = arith.constant dense<0xFF800000> : vector<40xf32>
    %126 = vector.multi_reduction <maximumf>, %125, %cst_66 [0] : vector<8x40xf32> to vector<40xf32>
    %127 = vector.shape_cast %126 : vector<40xf32> to vector<1x40xf32>
    %c1_67 = arith.constant 1 : index
    %c0_68 = arith.constant 0 : index
    %128 = vector.load %arg9[%c1_67, %c0_68] : memref<2x40xf32, #tpu.memory_space<vmem>>, vector<1x40xf32>
    tpu.vector_store %arg9[%c1_67, %c0_68], %127 {strides = array<i32>} : memref<2x40xf32, #tpu.memory_space<vmem>>, vector<1x40xf32>,
    %c0_69 = arith.constant 0 : index
    %c0_70 = arith.constant 0 : index
    %129 = vector.load %arg9[%c0_69, %c0_70] : memref<2x40xf32, #tpu.memory_space<vmem>>, vector<2x40xf32>
    %c0_71 = arith.constant 0 : index
    %c0_72 = arith.constant 0 : index
    %130 = vector.load %arg3[%c0_71, %c0_72] : memref<40x16xf32, #tpu.memory_space<vmem>>, vector<40x16xf32>
    %cst_73 = arith.constant dense<0.000000e+00> : vector<2x16xf32>
    %131 = tpu.matmul %129, %130, %cst_73 {dimension_numbers = #tpu.dot_dimension_numbers<[1], [0], [0], [1], [0, 0, 1, 1], [], []>} : vector<2x40xf32>, vector<40x16xf32>, vector<2x16xf32> -> vector<2x16xf32>
    %c0_74 = arith.constant 0 : index
    %c0_75 = arith.constant 0 : index
    %132 = vector.load %arg4[%c0_74, %c0_75] : memref<1x16xf32, #tpu.memory_space<vmem>>, vector<1x16xf32>
    %133 = vector.broadcast %132 : vector<1x16xf32> to vector<2x16xf32>
    %134 = arith.addf %131, %133 : vector<2x16xf32>
    %cst_76 = arith.constant 0.000000e+00 : f32
    %135 = vector.broadcast %cst_76 : f32 to vector<2x16xf32>
    %136 = arith.maximumf %134, %135 : vector<2x16xf32>
    %c0_77 = arith.constant 0 : index
    %c0_78 = arith.constant 0 : index
    %137 = vector.load %arg5[%c0_77, %c0_78] : memref<16x3xf32, #tpu.memory_space<vmem>>, vector<16x3xf32>
    %cst_79 = arith.constant dense<0.000000e+00> : vector<2x3xf32>
    %138 = tpu.matmul %136, %137, %cst_79 {dimension_numbers = #tpu.dot_dimension_numbers<[1], [0], [0], [1], [0, 0, 1, 1], [], []>} : vector<2x16xf32>, vector<16x3xf32>, vector<2x3xf32> -> vector<2x3xf32>
    %c0_80 = arith.constant 0 : index
    %c0_81 = arith.constant 0 : index
    %139 = vector.load %arg6[%c0_80, %c0_81] : memref<1x3xf32, #tpu.memory_space<vmem>>, vector<1x3xf32>
    %140 = vector.broadcast %139 : vector<1x3xf32> to vector<2x3xf32>
    %141 = arith.addf %138, %140 : vector<2x3xf32>
    %c0_82 = arith.constant 0 : index
    %c0_83 = arith.constant 0 : index
    %142 = vector.load %arg7[%c0_82, %c0_83] : memref<2x3xf32, #tpu.memory_space<vmem>>, vector<2x3xf32>
    tpu.vector_store %arg7[%c0_82, %c0_83], %141 {strides = array<i32>} : memref<2x3xf32, #tpu.memory_space<vmem>>, vector<2x3xf32>,
    return
  }
}

</mosaic_0001>

<bundles_post_ra>
// kernel: model_forward.1
= control target key start
LH: loop header
LB: loop body
LE: loop exit
PB: predicated region body
PF: predicated region fallthrough
CT: control target
= control target key end

     0   :  { %12 = vsyncpa [#allocation7], 0  ;;  %s1407_s0 = inlined_call_operand.vmem [shape: s32[16], index: 0, kind: input, shape index: {}]   ;;  %s1408_s1 = inlined_call_operand.hbm [shape: f32[50,512], index: 1, kind: input, shape index: {}]   ;;  %s1409_s2 = inlined_call_operand.hbm [shape: f32[40,512], index: 2, kind: input, shape index: {}]   ;;  %s1410_s3 = inlined_call_operand.vmem [shape: f32[40,16], index: 3, kind: input, shape index: {}]   ;;  %s1411_s4 = inlined_call_operand.vmem [shape: f32[1,16], index: 4, kind: input, shape index: {}]   ;;  %s1412_s5 = inlined_call_operand.vmem [shape: f32[16,3], index: 5, kind: input, shape index: {}]   ;;  %s1413_s6 = inlined_call_operand.vmem [shape: f32[1,3], index: 6, kind: input, shape index: {}]   ;;  %s1414_s7 = inlined_call_operand.hbm [shape: f32[2,3], index: 7, kind: output, shape index: {}]  }
   0x1   :  { %13 = vsyncpa [#allocation5], 0 }
   0x2   :  { %14 = vsyncpa [#allocation10], 0 }
   0x3   :  { %15 = vsyncpa [#allocation6], 0  ;;  %s22_s26 = sshll.u32 %s1407_s0, 4  ;;  %s23_s26 = int_to_ptr.vmem [resolvable:$true] %s22_s26 }
   0x4   :  { %s1094_s27 = scalar_lea.vmem %s23_s26, 16  ;;  %p1099_p1 = scmp.lt.s32.totalorder %s23_s26, %s23_s26 }
   0x5   :  { %p1095_p0 = scmp.ne.s32.totalorder %s23_s26, %s1094_s27  ;;  %p1100_p2 = scmp.lt.s32.totalorder %s1094_s27, %s1094_s27 }
   0x7   :  { %p1101_p3 = por %p1100_p2, %p1099_p1 }
   0x9   :  { %p1102_p4 = pnand %p1101_p3, %p1095_p0 }
   0xb   :  { %1105 = shalt.err (!%p1102_p4)
}
   0xc   :  { %s1180_s28 = smov [#allocation4]   ;;  %s1181_s29 = smov [#allocation8]  }
   0xd   :  { %25 = dma.vmem_to_smem %s23_s26, 16, %s1180_s28, [#allocation7]  }
   0xe   :  { %s31_s30 = sshll.u32 %s1181_s29, 4  ;;  %s1106_s10 = scalar_lea.hbm %s1408_s1, 3584  ;;  %s32_s30 = int_to_ptr.vmem [resolvable:$true] %s31_s30 }
   0xf   :  { %p1107_p5 = scmp.ne.s32.totalorder %s1408_s1, %s1106_s10  ;;  %p1110_p6 = scmp.lt.u32.totalorder %s1106_s10, %s1408_s1 }
  0x11   :  { %p1112_p7 = pnand %p1110_p6, %p1107_p5 }
  0x13   :  { %1115 = shalt.err (!%p1112_p7)
}
  0x14   :  { %s1116_s14 = scalar_lea.vmem %s32_s30, 3584  ;;  %p1121_p9 = scmp.lt.s32.totalorder %s32_s30, %s32_s30 }
  0x15   :  { %p1117_p8 = scmp.ne.s32.totalorder %s32_s30, %s1116_s14  ;;  %p1122_p10 = scmp.lt.s32.totalorder %s1116_s14, %s1116_s14 }
  0x17   :  { %p1123_p11 = por %p1122_p10, %p1121_p9 }
  0x19   :  { %p1124_p12 = pnand %p1123_p11, %p1117_p8 }
  0x1b   :  { %1127 = shalt.err (!%p1124_p12)
}
  0x1c   :  { %s1182_s15 = smov 512   ;;  %s1183_s16 = smov 32  }
  0x1d   :  { %37 = dma.hbm_to_vmem [thread:$0]  %s1408_s1, 3584, %s32_s30, [#allocation5], %s1182_s15, %s1182_s15, %s1183_s16  }
  0x1e   :  { %s1184_s19 = smov [#allocation9]   ;;  %s1128_s23 = scalar_lea.hbm %s1409_s2, 2560 }
  0x1f   :  { %s43_s20 = sshll.u32 %s1184_s19, 4  ;;  %p1129_p13 = scmp.ne.s32.totalorder %s1409_s2, %s1128_s23  ;;  %s44_s20 = int_to_ptr.vmem [resolvable:$true] %s43_s20 }
  0x20   :  { %p1132_p0 = scmp.lt.u32.totalorder %s1128_s23, %s1409_s2 }
  0x22   :  { %p1134_p1 = pnand %p1132_p0, %p1129_p13 }
  0x24   :  { %1137 = shalt.err (!%p1134_p1)
}
  0x25   :  { %s1138_s28 = scalar_lea.vmem %s44_s20, 2560  ;;  %p1143_p3 = scmp.lt.s32.totalorder %s44_s20, %s44_s20 }
  0x26   :  { %p1139_p2 = scmp.ne.s32.totalorder %s44_s20, %s1138_s28  ;;  %p1144_p4 = scmp.lt.s32.totalorder %s1138_s28, %s1138_s28 }
  0x28   :  { %p1145_p5 = por %p1144_p4, %p1143_p3 }
  0x2a   :  { %p1146_p6 = pnand %p1145_p5, %p1139_p2 }
  0x2c   :  { %1149 = shalt.err (!%p1146_p6)
}
  0x2d   :  { %49 = dma.hbm_to_vmem [thread:$0]  %s1409_s2, 2560, %s44_s20, [#allocation10], %s1182_s15, %s1182_s15, %s1183_s16  }
  0x2e   :  { %1172 = dma.done.wait [#allocation7], 16  }
  0x2f   :  { %1173 = vsyncadd [#allocation7], 4294967280 }
  0x30   :  { %1174 = dma.done.wait [#allocation5], 3584  }
  0x31   :  { %1175 = vsyncadd [#allocation5], 4294963712 }
  0x32   :  { %1176 = dma.done.wait [#allocation10], 2560  }
  0x33   :  { %1177 = vsyncadd [#allocation10], 4294964736 }
  0x34   :  { %67 = sfence }
  0x35   :  { %v280_v0 = vld [vmem:[#allocation9 + $0x8] sm:$0xff]  ;;  %v279_v2 = vld [vmem:[#allocation9] sm:$0xff]  ;;  %s1256_s30 = sld [smem:[#allocation4]]  ;;  %v1185_v7 = vmov 0.0   ;;  %s1262_s2 = sld [smem:[#allocation4 + $0x1]]  ;;  %v282_v12 = vld [vmem:[#allocation9 + $0x18] sm:$0xff]  ;;  %v78_v19 = vlaneseq }
  0x36   :  { %v284_v1 = vld [vmem:[#allocation9 + $0x28] sm:$0xff]  ;;  %v283_v4 = vld [vmem:[#allocation9 + $0x20] sm:$0xff]  ;;  %371 = vmatprep.mubr.f32.mxu0 %v1185_v7  ;;  %442 = vmatprep.mubr.f32.mxu1 %v1185_v7  ;;  %s1266_s8 = sld [smem:[#allocation4 + $0x2]]  ;;  %v286_v13 = vld [vmem:[#allocation9 + $0x38] sm:$0xff]  ;;  %s1269_s9 = sld [smem:[#allocation4 + $0x3]]  ;;  %vm303_vm1 = vcmask 326656  }
  0x37   :  { %v1258_v3 = vpack.c.bf16 %v284_v1, %v280_v0  ;;  %v288_v5 = vld [vmem:[#allocation9 + $0x48] sm:$0xff]  ;;  %v1014_v8 = vpack.c.bf16 %v283_v4, %v279_v2  ;;  %v287_v10 = vld [vmem:[#allocation9 + $0x40] sm:$0xff]  ;;  %v1020_v15 = vpack.c.bf16 %v286_v13, %v282_v12  ;;  %v281_v16 = vld [vmem:[#allocation9 + $0x10] sm:$0xff]  ;;  %s1273_s10 = sld [smem:[#allocation4 + $0x4]]  ;;  %s1276_s11 = sld [smem:[#allocation4 + $0x5]]  ;;  %vm1282_vm0 = vcmp.lt.s32.totalorder %v78_v19, 512 }
  0x38   :  { %v292_v6 = vld [vmem:[#allocation9 + $0x68] sm:$0xff]  ;;  %v291_v11 = vld [vmem:[#allocation9 + $0x60] sm:$0xff]  ;;  %v285_v17 = vld [vmem:[#allocation9 + $0x30] sm:$0xff]  ;;  %vm484_vm2 = vcmask 319488   ;;  %vm1187_vm3 = vmmov 0   ;;  %vm767_vm4 = vcmask 130048  }
  0x39   :  { %v1264_v9 = vpack.c.bf16 %v292_v6, %v288_v5  ;;  %1013 = vmatprep.subr.bf16.mxu0 %v1258_v3  ;;  %v1271_v14 = vpack.c.bf16 %v291_v11, %v287_v10  ;;  %v290_v18 = vld [vmem:[#allocation9 + $0x58] sm:$0xff]  ;;  %v1022_v20 = vpack.c.bf16 %v285_v17, %v281_v16  ;;  %v289_v22 = vld [vmem:[#allocation9 + $0x50] sm:$0xff]  ;;  %v296_v24 = vld [vmem:[#allocation9 + $0x88] sm:$0xff]  ;;  %1021 = vmatprep.subr.bf16.mxu1 %v1020_v15  ;;  %vm841_vm5 = vcmask 17408  }
  0x3a   :  { %1015 = vmatpush1.bf16.msra.mxu0 %v1014_v8  ;;  %v294_v21 = vld [vmem:[#allocation9 + $0x78] sm:$0xff]  ;;  %v293_v23 = vld [vmem:[#allocation9 + $0x70] sm:$0xff]  ;;  %v295_v28 = vld [vmem:[#allocation9 + $0x80] sm:$0xff] }
  0x3b   :  { %1017 = vmatprep.subr.bf16.mxu0 %v1264_v9  ;;  %v1024_v25 = vpack.c.bf16 %v294_v21, %v290_v18  ;;  %s69_s12 = sshra.s32 %s1256_s30, 3  ;;  %s72_s0 = sand.u32 7, %s1256_s30  ;;  %1023 = vmatpush1.bf16.msra.mxu1 %v1022_v20  ;;  %v1026_v26 = vpack.c.bf16 %v293_v23, %v289_v22  ;;  %v298_v29 = vld [vmem:[#allocation9 + $0x98] sm:$0xff]  ;;  %v297_v31 = vld [vmem:[#allocation9 + $0x90] sm:$0xff]  ;;  %v673_v22 = vld [vmem:[%s1410_s3 + $0x8] sm:$0xff] }
  0x3c   :  { %s967_s13 = sshll.u32 %s69_s12, 5  ;;  %s85_s14 = sshra.s32 %s1262_s2, 3  ;;  %v672_v21 = vld [vmem:[%s1410_s3] sm:$0xff] }
  0x3d   :  { %1025 = vmatprep.subr.bf16.mxu1 %v1024_v25  ;;  %s75_s15 = sadd.s32 %s967_s13, %s72_s0  ;;  %s88_s16 = sand.u32 7, %s1262_s2  ;;  %v1045_v23 = vpack.c.bf16 %v673_v22, %v672_v21 }
  0x3e   :  { %1019 = vmatpush1.bf16.msra.mxu0 %v1271_v14  ;;  %s968_s17 = sshll.u32 %s85_s14, 5  ;;  %s76_s18 = scalar_lea.vmem [#allocation8], %s75_s15 }
  0x3f   :  { %315 = vmatprep.subr.mxu0 %v296_v24  ;;  %v77_v30 = vld [vmem:[%s76_s18] ss:$8 sm:$0xf]  ;;  %s91_s19 = sadd.s32 %s968_s17, %s88_s16  ;;  %s98_s20 = sshra.s32 %s1266_s8, 3  ;;  %1027 = vmatpush1.bf16.msra.mxu1 %v1026_v26 }
  0x40   :  { %82 = vst.msk [vmem:[#allocation2] ss:$8 sm:$0xf] %vm1282_vm0, %v77_v30  ;;  %s101_s21 = sand.u32 7, %s1266_s8  ;;  %386 = vmatprep.subr.mxu1 %v298_v29  ;;  %s92_s22 = scalar_lea.vmem [#allocation8], %s91_s19 }
  0x41   :  { %v93_v32 = vld [vmem:[%s92_s22] ss:$8 sm:$0xf]  ;;  %s969_s23 = sshll.u32 %s98_s20, 5  ;;  %s111_s24 = sshra.s32 %s1269_s9, 3 }
  0x42   :  { %316 = vmatpush1.msra.mxu0 %v295_v28  ;;  %95 = vst.msk [vmem:[#allocation2 + $0x1] ss:$8 sm:$0xf] %vm1282_vm0, %v93_v32  ;;  %s104_s25 = sadd.s32 %s969_s23, %s101_s21  ;;  %s114_s26 = sand.u32 7, %s1269_s9 }
  0x43   :  { %372 = vmatmul.mubr.f32.vlgmr.msra.gmra.mrb[0].mxu0 %v1185_v7  ;;  %1029 = vmatprep.subr.bf16.mxu0 %v1258_v3  ;;  %s970_s27 = sshll.u32 %s111_s24, 5  ;;  %s105_s28 = scalar_lea.vmem [#allocation8], %s104_s25 }
  0x44   :  { %1031 = vmatpush1.bf16.msra.mxu0 %v1014_v8  ;;  %557 = vmatprep.mubr.f32.mxu0 %v1185_v7  ;;  %v106_v33 = vld [vmem:[%s105_s28] ss:$8 sm:$0xf]  ;;  %s117_s1 = sadd.s32 %s970_s27, %s114_s26  ;;  %s124_s29 = sshra.s32 %s1273_s10, 3 }
  0x45   :  { %387 = vmatpush1.msra.mxu1 %v297_v31  ;;  %1033 = vmatprep.subr.bf16.mxu0 %v1264_v9  ;;  %108 = vst.msk [vmem:[#allocation2 + $0x2] ss:$8 sm:$0xf] %vm1282_vm0, %v106_v33  ;;  %s127_s30 = sand.u32 7, %s1273_s10  ;;  %s118_s2 = scalar_lea.vmem [#allocation8], %s117_s1 }
  0x46   :  { %443 = vmatmul.mubr.f32.vlgmr.msra.gmra.mrb[0].mxu1 %v1185_v7  ;;  %1037 = vmatprep.subr.bf16.mxu1 %v1020_v15  ;;  %v119_v34 = vld [vmem:[%s118_s2] ss:$8 sm:$0xf]  ;;  %s971_s8 = sshll.u32 %s124_s29, 5  ;;  %s137_s9 = sshra.s32 %s1276_s11, 3 }
  0x47   :  { %1039 = vmatpush1.bf16.msra.mxu1 %v1022_v20  ;;  %628 = vmatprep.mubr.f32.mxu1 %v1185_v7  ;;  %121 = vst.msk [vmem:[#allocation2 + $0x3] ss:$8 sm:$0xf] %vm1282_vm0, %v119_v34  ;;  %s130_s12 = sadd.s32 %s971_s8, %s127_s30  ;;  %s140_s0 = sand.u32 7, %s1276_s11 }
  0x48   :  { %1041 = vmatprep.subr.bf16.mxu1 %v1024_v25  ;;  %1035 = vmatpush1.bf16.msra.mxu0 %v1271_v14  ;;  %s972_s13 = sshll.u32 %s137_s9, 5  ;;  %s131_s14 = scalar_lea.vmem [#allocation8], %s130_s12  ;;  %v674_v25 = vld [vmem:[%s1410_s3 + $0x10] sm:$0xff] }
  0x49   :  { %501 = vmatprep.subr.mxu0 %v296_v24  ;;  %v132_v35 = vld [vmem:[%s131_s14] ss:$8 sm:$0xf]  ;;  %s143_s10 = sadd.s32 %s972_s13, %s140_s0  ;;  %s925_s15 = sld [smem:[#allocation4 + $0x6]]  ;;  %v1186_v24 = vmov 0.0|0.0  }
  0x4a   :  { %134 = vst.msk [vmem:[#allocation2 + $0x4] ss:$8 sm:$0xf] %vm1282_vm0, %v132_v35  ;;  %s928_s16 = sld [smem:[#allocation4 + $0x7]]  ;;  %s144_s17 = scalar_lea.vmem [#allocation8], %s143_s10 }
  0x4b   :  { %1043 = vmatpush1.bf16.msra.mxu1 %v1026_v26  ;;  %v145_v36 = vld [vmem:[%s144_s17] ss:$8 sm:$0xf]  ;;  %s931_s27 = sld [smem:[#allocation4 + $0x8]]  ;;  %s934_s28 = sld [smem:[#allocation4 + $0x9]] }
  0x4c   :  { %572 = vmatprep.subr.mxu1 %v298_v29  ;;  %502 = vmatpush1.msra.mxu0 %v295_v28  ;;  %147 = vst.msk [vmem:[#allocation2 + $0x5] ss:$8 sm:$0xf] %vm1282_vm0, %v145_v36  ;;  %s937_s1 = sld [smem:[#allocation4 + $0xa]]  ;;  %s1318_s29 = sld [smem:[#allocation4 + $0xb]]  ;;  %v675_v26 = vld [vmem:[%s1410_s3 + $0x18] sm:$0xff] }
  0x4d   :  { %s1320_s30 = sld [smem:[#allocation4 + $0xc]]  ;;  %s1322_s2 = sld [smem:[#allocation4 + $0xd]]  ;;  %1044 = vmatprep.subr.bf16.mxu0 %v1186_v24  ;;  %v1048_v27 = vpack.c.bf16 %v675_v26, %v674_v25  ;;  %v676_v28 = vld [vmem:[%s1410_s3 + $0x20] sm:$0xff] }
  0x4e   :  { %s1324_s8 = sld [smem:[#allocation4 + $0xe]]  ;;  %s1326_s9 = sld [smem:[#allocation4 + $0xf]] }
  0x4f   :  { %573 = vmatpush1.msra.mxu1 %v297_v31  ;;  %s150_s11 = sshra.s32 %s925_s15, 3  ;;  %s153_s18 = sand.u32 7, %s925_s15 }
  0x50   :  { %s973_s19 = sshll.u32 %s150_s11, 5  ;;  %s163_s20 = sshra.s32 %s928_s16, 3  ;;  %1050 = vmatprep.subr.bf16.mxu1 %v1186_v24 }
  0x51   :  { %s156_s21 = sadd.s32 %s973_s19, %s153_s18  ;;  %s166_s22 = sand.u32 7, %s928_s16 }
  0x52   :  { %s974_s23 = sshll.u32 %s163_s20, 5  ;;  %s157_s24 = scalar_lea.vmem [#allocation8], %s156_s21 }
  0x53   :  { %v158_v37 = vld [vmem:[%s157_s24] ss:$8 sm:$0xf]  ;;  %s169_s25 = sadd.s32 %s974_s23, %s166_s22  ;;  %s176_s12 = sshra.s32 %s931_s27, 3 }
  0x54   :  { %160 = vst.msk [vmem:[#allocation2 + $0x6] ss:$8 sm:$0xf] %vm1282_vm0, %v158_v37  ;;  %s170_s26 = scalar_lea.vmem [#allocation8], %s169_s25  ;;  %s179_s0 = sand.u32 7, %s931_s27 }
  0x55   :  { %v171_v38 = vld [vmem:[%s170_s26] ss:$8 sm:$0xf]  ;;  %s975_s13 = sshll.u32 %s176_s12, 5  ;;  %s189_s14 = sshra.s32 %s934_s28, 3 }
  0x56   :  { %173 = vst.msk [vmem:[#allocation2 + $0x7] ss:$8 sm:$0xf] %vm1282_vm0, %v171_v38  ;;  %s182_s10 = sadd.s32 %s975_s13, %s179_s0  ;;  %s192_s15 = sand.u32 7, %s934_s28 }
  0x57   :  { %s976_s16 = sshll.u32 %s189_s14, 5  ;;  %s183_s17 = scalar_lea.vmem [#allocation8], %s182_s10 }
  0x58   :  { %v184_v39 = vld [vmem:[%s183_s17] ss:$8 sm:$0xf]  ;;  %s195_s11 = sadd.s32 %s976_s16, %s192_s15  ;;  %s202_s18 = sshra.s32 %s937_s1, 3 }
  0x59   :  { %186 = vst.msk [vmem:[#allocation2 + $0x20] ss:$8 sm:$0xf] %vm1282_vm0, %v184_v39  ;;  %s205_s19 = sand.u32 7, %s937_s1  ;;  %s196_s20 = scalar_lea.vmem [#allocation8], %s195_s11 }
  0x5a   :  { %v197_v40 = vld [vmem:[%s196_s20] ss:$8 sm:$0xf]  ;;  %s977_s21 = sshll.u32 %s202_s18, 5  ;;  %s215_s22 = sshra.s32 %s1318_s29, 3 }
  0x5b   :  { %199 = vst.msk [vmem:[#allocation2 + $0x21] ss:$8 sm:$0xf] %vm1282_vm0, %v197_v40  ;;  %s208_s23 = sadd.s32 %s977_s21, %s205_s19  ;;  %s218_s24 = sand.u32 7, %s1318_s29 }
  0x5c   :  { %s978_s25 = sshll.u32 %s215_s22, 5  ;;  %s209_s26 = scalar_lea.vmem [#allocation8], %s208_s23 }
  0x5d   :  { %v210_v41 = vld [vmem:[%s209_s26] ss:$8 sm:$0xf]  ;;  %s221_s27 = sadd.s32 %s978_s25, %s218_s24  ;;  %s228_s28 = sshra.s32 %s1320_s30, 3 }
  0x5e   :  { %212 = vst.msk [vmem:[#allocation2 + $0x22] ss:$8 sm:$0xf] %vm1282_vm0, %v210_v41  ;;  %s231_s1 = sand.u32 7, %s1320_s30  ;;  %s222_s12 = scalar_lea.vmem [#allocation8], %s221_s27  ;;  %v299_v47 = vld [vmem:[#allocation2] sm:$0xff] }
  0x5f   :  { %v223_v42 = vld [vmem:[%s222_s12] ss:$8 sm:$0xf]  ;;  %s979_s0 = sshll.u32 %s228_s28, 5  ;;  %s241_s13 = sshra.s32 %s1322_s2, 3 }
  0x60   :  { %225 = vst.msk [vmem:[#allocation2 + $0x23] ss:$8 sm:$0xf] %vm1282_vm0, %v223_v42  ;;  %s234_s29 = sadd.s32 %s979_s0, %s231_s1  ;;  %s244_s14 = sand.u32 7, %s1322_s2  ;;  %v300_v48 = vld [vmem:[#allocation2 + $0x8] sm:$0xff]  ;;  %v302_v56 = vld [vmem:[#allocation2 + $0x18] sm:$0xff] }
  0x61   :  { %s980_s10 = sshll.u32 %s241_s13, 5  ;;  %s235_s15 = scalar_lea.vmem [#allocation8], %s234_s29  ;;  %v301_v59 = vld [vmem:[#allocation2 + $0x10] sm:$0xff] }
  0x62   :  { %v236_v43 = vld [vmem:[%s235_s15] ss:$8 sm:$0xf]  ;;  %s247_s16 = sadd.s32 %s980_s10, %s244_s14  ;;  %s254_s17 = sshra.s32 %s1324_s8, 3 }
  0x63   :  { %238 = vst.msk [vmem:[#allocation2 + $0x24] ss:$8 sm:$0xf] %vm1282_vm0, %v236_v43  ;;  %s257_s30 = sand.u32 7, %s1324_s8  ;;  %s248_s11 = scalar_lea.vmem [#allocation8], %s247_s16 }
  0x64   :  { %v249_v44 = vld [vmem:[%s248_s11] ss:$8 sm:$0xf]  ;;  %s981_s18 = sshll.u32 %s254_s17, 5  ;;  %s267_s19 = sshra.s32 %s1326_s9, 3 }
  0x65   :  { %251 = vst.msk [vmem:[#allocation2 + $0x25] ss:$8 sm:$0xf] %vm1282_vm0, %v249_v44  ;;  %s260_s20 = sadd.s32 %s981_s18, %s257_s30  ;;  %s270_s21 = sand.u32 7, %s1326_s9 }
  0x66   :  { %s982_s22 = sshll.u32 %s267_s19, 5  ;;  %s261_s2 = scalar_lea.vmem [#allocation8], %s260_s20 }
  0x67   :  { %v262_v45 = vld [vmem:[%s261_s2] ss:$8 sm:$0xf]  ;;  %s273_s23 = sadd.s32 %s982_s22, %s270_s21  ;;  %s1188_s11 = smov [#allocation11]  }
  0x68   :  { %264 = vst.msk [vmem:[#allocation2 + $0x26] ss:$8 sm:$0xf] %vm1282_vm0, %v262_v45  ;;  %s274_s24 = scalar_lea.vmem [#allocation8], %s273_s23  ;;  %s849_s18 = sshll.u32 %s1188_s11, 4  ;;  %s850_s18 = int_to_ptr.vmem [resolvable:$true] %s849_s18 }
  0x69   :  { %v275_v46 = vld [vmem:[%s274_s24] ss:$8 sm:$0xf]  ;;  %p1155_p8 = scmp.lt.s32.totalorder %s850_s18, %s850_s18 }
  0x6a   :  { %277 = vst.msk [vmem:[#allocation2 + $0x27] ss:$8 sm:$0xf] %vm1282_vm0, %v275_v46 }
  0x71   :  { %v486_v29 = vld [vmem:[#allocation2 + $0x20] sm:$0xff]  ;;  %v487_v30 = vld [vmem:[#allocation2 + $0x28] sm:$0xff]  ;;  %v489_v39 = vld [vmem:[#allocation2 + $0x38] sm:$0xff] }
 0x116   :  { %v373_v49 = vpop.f32.mrb[0].mxu0 }
 0x117   :  { %v449_v50 = vadd.f32 %v373_v49, %v299_v47  ;;  %v375_v51 = vpop.f32.mrb[1].mxu0 }
 0x118   :  { %v450_v52 = vadd.f32 %v375_v51, %v300_v48 }
 0x119   :  { %v955_v53 = vmul.f32 -1.442695, %v449_v50  ;;  %v444_v54 = vpop.f32.mrb[0].mxu1 }
 0x11a   :  { %v956_v55 = vmul.f32 -1.442695, %v450_v52  ;;  %v446_v57 = vpop.f32.mrb[1].mxu1  ;;  %v451_v61 = vadd.f32 %v444_v54, %v301_v59 }
 0x11b   :  { %1062 = vpow2.f32 %v955_v53  ;;  %v452_v58 = vadd.f32 %v446_v57, %v302_v56 }
 0x11c   :  { %1064 = vpow2.f32 %v956_v55 }
 0x11d   :  { %v957_v60 = vmul.f32 -1.442695, %v452_v58 }
 0x11f   :  { %1066 = vpow2.f32 %v957_v60 }
 0x120   :  { %1068 = vtanh.f32 %v451_v61 }
 0x125   :  { %v1063_v62 = vpop.eup %1062 }
 0x126   :  { %v1065_v63 = vpop.eup %1064  ;;  %v456_v0 = vadd.f32 1.0, %v1063_v62 }
 0x127   :  { %v462_v1 = vadd.f32 1.0, %v1065_v63 }
 0x128   :  { %1070 = vrcp.f32 %v456_v0 }
 0x129   :  { %1072 = vrcp.f32 %v462_v1  ;;  %v1067_v2 = vpop.eup %1066 }
 0x12a   :  { %v1069_v3 = vpop.eup %1068  ;;  %v469_v5 = vadd.f32 1.0, %v1067_v2  ;;  %v758_v2 = vld [vmem:[%s1412_s5] sm:$0xff] }
 0x12c   :  { %1074 = vrcp.f32 %v469_v5  ;;  %v963_v5 = vld [vmem:[%s1411_s4] ss:$0 sm:$0xff] }
 0x132   :  { %v1071_v4 = vpop.eup %1070 }
 0x133   :  { %v1073_v6 = vpop.eup %1072  ;;  %v473_v8 = vmul.f32 %v1071_v4, %v1069_v3  ;;  %v759_v3 = vld [vmem:[%s1412_s5 + $0x8] sm:$0xff]  ;;  %s1150_s5 = scalar_lea.vmem %s850_s18, 32 }
 0x134   :  { %v472_v9 = vmul.f32 0.0, %v1073_v6  ;;  %v1051_v4 = vpack.c.bf16 %v759_v3, %v758_v2  ;;  %p1151_p7 = scmp.ne.s32.totalorder %s850_s18, %s1150_s5  ;;  %p1156_p9 = scmp.lt.s32.totalorder %s1150_s5, %s1150_s5 }
 0x136   :  { %v1354_v10 = vadd.f32 %v473_v8, %v472_v9  ;;  %v1075_v11 = vpop.eup %1074  ;;  %p1157_p10 = por %p1156_p9, %p1155_p8 }
 0x138   :  { %1076 = vtanh.f32 %v1354_v10  ;;  %p1158_p11 = pnand %p1157_p10, %p1151_p7 }
 0x142   :  { %v1077_v12 = vpop.eup %1076 }
 0x143   :  { %v476_v13 = vmul.f32 %v1077_v12, %v1075_v11  ;;  %v965_v11 = vld [vmem:[%s1413_s6] ss:$0 sm:$0xff] }
 0x145   :  { %v477_v14 = vsel %vm303_vm1, %v476_v13, -inf  ;;  %958 = vmatmul.mubr.msk.f32.vlgmr.msra.gmra.mrb[2].mxu0 %vm303_vm1, %v476_v13  ;;  %959 = vmatmul.mubr.msk.f32.vlgmr.msra.gmra.mrb[2].mxu1 %vm303_vm1, %v476_v13 }
 0x146   :  { %v478_v15 = vrot.slane %v477_v14, 4  ;;  %1046 = vmatpush3.bf16.msra.mxu0 %v1045_v23  ;;  %1002 = vmatprep.mubr.msk.f32.mxu0 %vm1187_vm3, %v1185_v7 }
 0x147   :  { %1047 = vmatprep.subr.bf16.mxu0 %v1186_v24  ;;  %1009 = vmatprep.mubr.msk.f32.mxu1 %vm1187_vm3, %v1185_v7 }
 0x148   :  { %v479_v16 = vmax.f32 %v477_v14, %v478_v15  ;;  %1052 = vmatpush3.bf16.msra.mxu1 %v1051_v4 }
 0x14a   :  { %v480_v17 = vrot.slane %v479_v16, 2  ;;  %1049 = vmatpush3.bf16.msra.mxu0 %v1048_v27 }
 0x14b   :  { %1000 = vmatprep.subr.mxu0 %v1185_v7  ;;  %v488_v7 = vld [vmem:[#allocation2 + $0x30] sm:$0xff] }
 0x14c   :  { %v481_v18 = vmax.f32 %v479_v16, %v480_v17 }
 0x14e   :  { %v482_v19 = vrot.slane %v481_v18, 1  ;;  %1001 = vmatpush3.msra.mxu0 %v676_v28 }
 0x150   :  { %v483_v20 = vmax.f32 %v481_v18, %v482_v19 }
 0x152   :  { %485 = vst.msk [vmem:[#allocation3] sm:$0x1] %vm484_vm2, %v483_v20 }
 0x218   :  { %v559_v31 = vpop.f32.mrb[2].mxu0  ;;  %v630_v32 = vpop.f32.mrb[2].mxu1 }
 0x219   :  { %v635_v33 = vadd.f32 %v559_v31, %v486_v29  ;;  %v561_v34 = vpop.f32.mrb[3].mxu0  ;;  %v632_v35 = vpop.f32.mrb[3].mxu1  ;;  %v637_v42 = vadd.f32 %v630_v32, %v488_v7 }
 0x21a   :  { %v636_v36 = vadd.f32 %v561_v34, %v487_v30  ;;  %v638_v40 = vadd.f32 %v632_v35, %v489_v39 }
 0x21b   :  { %v960_v37 = vmul.f32 -1.442695, %v635_v33 }
 0x21c   :  { %v961_v38 = vmul.f32 -1.442695, %v636_v36  ;;  %v962_v41 = vmul.f32 -1.442695, %v638_v40 }
 0x21d   :  { %1078 = vpow2.f32 %v960_v37 }
 0x21e   :  { %1080 = vpow2.f32 %v961_v38 }
 0x21f   :  { %1082 = vpow2.f32 %v962_v41 }
 0x220   :  { %1084 = vtanh.f32 %v637_v42 }
 0x227   :  { %v1079_v43 = vpop.eup %1078 }
 0x228   :  { %v1081_v44 = vpop.eup %1080  ;;  %v642_v45 = vadd.f32 1.0, %v1079_v43 }
 0x229   :  { %v648_v46 = vadd.f32 1.0, %v1081_v44  ;;  %v1083_v47 = vpop.eup %1082 }
 0x22a   :  { %1086 = vrcp.f32 %v642_v45  ;;  %v1085_v48 = vpop.eup %1084  ;;  %v655_v52 = vadd.f32 1.0, %v1083_v47 }
 0x22b   :  { %1088 = vrcp.f32 %v648_v46 }
 0x22c   :  { %1090 = vrcp.f32 %v655_v52 }
 0x234   :  { %v1087_v49 = vpop.eup %1086 }
 0x235   :  { %v1089_v50 = vpop.eup %1088  ;;  %v659_v51 = vmul.f32 %v1087_v49, %v1085_v48 }
 0x236   :  { %v658_v53 = vmul.f32 %v1089_v50, %v1354_v10  ;;  %v1091_v55 = vpop.eup %1090 }
 0x238   :  { %v660_v54 = vadd.f32 %v659_v51, %v658_v53 }
 0x23a   :  { %1092 = vtanh.f32 %v660_v54 }
 0x244   :  { %v1093_v56 = vpop.eup %1092 }
 0x245   :  { %v662_v57 = vmul.f32 %v1093_v56, %v1091_v55 }
 0x247   :  { %v663_v58 = vsel %vm303_vm1, %v662_v57, -inf }
 0x248   :  { %v664_v59 = vrot.slane %v663_v58, 4 }
 0x24a   :  { %v665_v60 = vmax.f32 %v663_v58, %v664_v59 }
 0x24c   :  { %v666_v61 = vrot.slane %v665_v60, 2 }
 0x24e   :  { %v667_v62 = vmax.f32 %v665_v60, %v666_v61 }
 0x250   :  { %v668_v63 = vrot.slane %v667_v62, 1 }
 0x252   :  { %v669_v0 = vmax.f32 %v667_v62, %v668_v63 }
 0x254   :  { %670 = vst.msk [vmem:[#allocation3 + $0x1] sm:$0x1] %vm484_vm2, %v669_v0 }
 0x25b   :  { %v671_v1 = vld [vmem:[#allocation3] sm:$0x3] }
 0x25c   :  { %1003 = vmatmul.mubr.msk.f32.vlgmr.msra.gmra.mrb[4].mxu0 %vm303_vm1, %v671_v1 }
 0x32f   :  { %v753_v6 = vpop.f32.mrb[4].mxu0 }
 0x330   :  { %v754_v8 = vadd.f32 %v963_v5, %v753_v6  ;;  %v1004_v9 = vpop.f32.mrb[5].mxu0 }
 0x332   :  { %v757_v10 = vmax.f32 %v754_v8, 0.0 }
 0x334   :  { %1010 = vmatmul.mubr.msk.f32.vlgmr.msra.gmra.mrb[4].mxu1 %vm767_vm4, %v757_v10 }
 0x407   :  { %v837_v12 = vpop.f32.mrb[4].mxu1 }
 0x408   :  { %v838_v13 = vadd.f32 %v965_v11, %v837_v12  ;;  %v1011_v14 = vpop.f32.mrb[5].mxu1 }
 0x40a   :  { %842 = vst.msk [vmem:[#allocation11] sm:$0x3] %vm841_vm5, %v838_v13 }
 0x40b   :  { %1161 = shalt.err (!%p1158_p11)
}
 0x40c   :  { %s1162_s20 = scalar_lea.hbm %s1414_s7, 32 }
 0x40d   :  { %p1163_p12 = scmp.ne.s32.totalorder %s1414_s7, %s1162_s20  ;;  %p1166_p13 = scmp.lt.u32.totalorder %s1162_s20, %s1414_s7 }
 0x40f   :  { %p1168_p0 = pnand %p1166_p13, %p1163_p12 }
 0x411   :  { %1171 = shalt.err (!%p1168_p0)
}
 0x412   :  { %852 = dma.vmem_to_hbm [thread:$0]  %s850_s18, 32, %s1414_s7, [#allocation6]  }
 0x413   :  { %1178 = dma.done.wait [#allocation6], 32  }
 0x414   :  { %1179 = vsyncadd [#allocation6], 4294967264 }
 0x415   :  { %856 = vsyncpa [#allocation5], 1 }
 0x416   :  { %857 = vsyncpa [#allocation10], 1 }
 0x417   :  { %858 = vsyncpa [#allocation6], 1 }
 0x418   :  { %859 = vsyncpa [#allocation7], 1 }

</bundles_post_ra>
